<compile_context>
chip_gen: v5e
topology: v5e:2x2
jax: 0.10.0
libtpu: 0.0.40
codegen_flags: <defaults>
</compile_context>

<pallas_src>
import jax
import jax.numpy as jnp
from jax.experimental import pallas as pl
from jax.experimental.pallas import tpu as pltpu

_LANES = 128
_SUBLANES = 8


def _make_flatten_block_kernel(k, S, T_out):
    """Build the kernel for fixed conv taps k, spatial size S, output steps T_out."""

    def kernel(x_ref, w_ref, b_ref, o_ref):
        # x_ref: [block_B, C, T*S]   all frames for this batch tile (T >= T_out*k)
        # w_ref: [k, C, Cpad]        Conv1d weight, tap-major, 1/S folded in
        # b_ref: [1, Cpad]           Conv1d bias (lane-padded)
        # o_ref: [block_B, T_out, Cpad]  lane-dense output tile
        block_B, C, _ = x_ref.shape
        Cpad = o_ref.shape[-1]
        aligned = (S % _LANES) == 0
        n_chunks = S // _LANES

        bias = b_ref[...].astype(jnp.float32)                 # [1, Cpad]
        for ti in range(T_out):                                # static: output steps
            acc = jnp.zeros((block_B, Cpad), dtype=jnp.float32)
            for j in range(k):                                 # static: conv taps
                base = (ti * k + j) * S
                if aligned:
                    # Staged spatial sum: plain VPU adds across aligned 128-lane
                    # chunks, then a single 128-wide lane reduce on the partial.
                    part = x_ref[:, :, base:base + _LANES].astype(jnp.float32)
                    for q in range(1, n_chunks):               # static unroll, VPU adds
                        lo = base + q * _LANES
                        part = part + x_ref[:, :, lo:lo + _LANES].astype(jnp.float32)
                    pooled = jnp.sum(part, axis=-1)            # [block_B, C]
                else:
                    # Unaligned S: one masked lane reduce over the in-VMEM slice
                    # (cheap; avoids any HBM pad copy in the wrapper).
                    pooled = jnp.sum(
                        x_ref[:, :, base:base + S].astype(jnp.float32), axis=-1)
                # Channel mixing for this tap on the MXU (1/S folded into w_ref).
                acc = acc + jnp.dot(pooled, w_ref[j],
                                    preferred_element_type=jnp.float32)
            o_ref[:, ti, :] = (acc + bias).astype(o_ref.dtype)

    return kernel


def cnet_flatten_block(x, weight, bias, kernel_size, *, block_bytes_budget=8 << 20):
    """x: [B, C, T, H, W, D]; weight: [C_out, C_in, k]; bias: [C_out].

    Returns [B, C, T_out], squeezed to [B, C] when T_out == 1 (PyTorch parity).
    """
    B, C, T, H, W, D = x.shape
    k = int(kernel_size)
    T_out = (T - k) // k + 1
    assert T_out >= 1, "temporal extent too small for the conv kernel"
    assert weight.shape == (C, C, k) and bias.shape == (C,)
    S = H * W * D
    Cpad = max(_LANES, pl.cdiv(C, _LANES) * _LANES)            # lane-dense out tile

    # --- zero-copy layout prep: only contiguous reshapes of x ------------------
    x3 = x.reshape(B, C, T * S)

    # Conv1d weight [co, ci, j] -> [j, ci, co_padded], with the mean's 1/S folded in.
    w_k = jnp.transpose(weight, (2, 1, 0)).astype(jnp.float32) / float(S)
    w_k = jnp.pad(w_k, ((0, 0), (0, 0), (0, Cpad - C)))
    b_row = jnp.pad(bias.astype(jnp.float32), (0, Cpad - C)).reshape(1, Cpad)

    # --- batch tile: biggest divisor of B whose x block fits the VMEM budget ---
    itemsize = jnp.dtype(x3.dtype).itemsize
    lane_rows = pl.cdiv(T * S, _LANES) * _LANES                # VMEM lane padding
    sub_rows = pl.cdiv(C, _SUBLANES) * _SUBLANES               # VMEM sublane padding
    bytes_per_b = sub_rows * lane_rows * itemsize
    cands = [d for d in range(1, B + 1)
             if B % d == 0 and (d % _SUBLANES == 0 or d == B)]
    fitting = [d for d in cands if d * bytes_per_b <= block_bytes_budget]
    block_B = max(fitting) if fitting else min(cands)
    # TODO(synk): for volumes where even the smallest batch tile overflows VMEM,
    # add an S-reduction grid axis ("arbitrary") with a pl.when-finalized accumulator.

    x_blk_bytes = block_B * bytes_per_b
    out_blk_bytes = block_B * T_out * Cpad * 4
    vmem_need = (2 * x_blk_bytes + 2 * out_blk_bytes
                 + (w_k.size + b_row.size) * 4 + (1 << 20))
    # >= 32 MiB lifts the v5e 16 MiB scoped default; cap at 64 MiB (v7x physical).
    vmem_limit = int(min(max(vmem_need, 32 << 20), 64 << 20))

    grid = (B // block_B,)
    flops = int(B * T_out * k * (S * C + 2 * C * Cpad))
    bytes_accessed = int(B * C * T * S * itemsize
                         + (w_k.size + b_row.size) * 4 + B * T_out * Cpad * 4)

    kernel = _make_flatten_block_kernel(k, S, T_out)
    out = pl.pallas_call(
        kernel,
        out_shape=jax.ShapeDtypeStruct((B, T_out, Cpad), jnp.float32),
        grid_spec=pltpu.PrefetchScalarGridSpec(
            num_scalar_prefetch=0,
            grid=grid,
            in_specs=[
                # All frames and channels for this batch tile (full trailing dims,
                # so no lane/sublane alignment constraint and no HBM pad copy).
                pl.BlockSpec((block_B, C, T * S), lambda bi: (bi, 0, 0)),
                pl.BlockSpec((k, C, Cpad), lambda bi: (0, 0, 0)),   # resident weight
                pl.BlockSpec((1, Cpad), lambda bi: (0, 0)),          # resident bias
            ],
            out_specs=pl.BlockSpec((block_B, T_out, Cpad), lambda bi: (bi, 0, 0)),
        ),
        compiler_params=pltpu.CompilerParams(
            dimension_semantics=("parallel",),
            vmem_limit_bytes=vmem_limit,
        ),
        cost_estimate=pl.CostEstimate(flops=flops, transcendentals=0,
                                      bytes_accessed=bytes_accessed),
    )(x3, w_k, b_row)

    # --- back to PyTorch output convention (tiny arrays, wrapper-side) ---------
    out = out[:, :, :C]                       # drop lane padding -> [B, T_out, C]
    out = jnp.transpose(out, (0, 2, 1))       # [B, C, T_out]
    if T_out == 1:
        out = out[..., 0]                     # .squeeze(-1)
    return out


def _reference(x, weight, bias, kernel_size):
    """Pure-JAX reference of the PyTorch forward, for validation."""
    B, C, T, H, W, D = x.shape
    k = kernel_size
    T_out = (T - k) // k + 1
    pooled = jnp.mean(x.reshape(B, C, T, -1), axis=-1)          # [B, C, T]
    pooled = pooled[:, :, : T_out * k].reshape(B, C, T_out, k)  # [B, C, T_out, k]
    out = jnp.einsum("bcti,oci->bot", pooled, weight) + bias[None, :, None]
    if T_out == 1:
        out = out[..., 0]
    return out


if __name__ == "__main__":
    # Canonical module config: n_features=8, kernel_size=2, T=2 (temporal dim -> 1),
    # spatial 8x8x8 (S = 512, lane-aligned).
    B, C, T, H, W, D = 8, 8, 2, 8, 8, 8
    kernel_size = 2

    key = jax.random.PRNGKey(0)
    kx, kw, kb = jax.random.split(key, 3)
    x = jax.random.normal(kx, (B, C, T, H, W, D), dtype=jnp.float32)
    weight = 0.1 * jax.random.normal(kw, (C, C, kernel_size), dtype=jnp.float32)
    bias = 0.05 * jax.random.normal(kb, (C,), dtype=jnp.float32)

    out = jax.block_until_ready(cnet_flatten_block(x, weight, bias, kernel_size))
    ref = _reference(x, weight, bias, kernel_size)
    assert out.shape == ref.shape == (B, C), (out.shape, ref.shape)
    assert jnp.allclose(out, ref, atol=1e-5, rtol=1e-5), "mismatch vs reference (T_out == 1)"

    # Second config: T_out > 1 plus a non-lane-aligned spatial volume (exercises the
    # in-kernel T_out loop and the unaligned-S reduce path, with no HBM pad copy).
    B2, C2, T2, H2, W2, D2 = 4, 8, 4, 4, 4, 4
    x2 = jax.random.normal(kx, (B2, C2, T2, H2, W2, D2), dtype=jnp.float32)
    w2 = 0.1 * jax.random.normal(kw, (C2, C2, kernel_size), dtype=jnp.float32)
    b2 = 0.05 * jax.random.normal(kb, (C2,), dtype=jnp.float32)
    out2 = jax.block_until_ready(cnet_flatten_block(x2, w2, b2, kernel_size))
    ref2 = _reference(x2, w2, b2, kernel_size)
    assert out2.shape == ref2.shape == (B2, C2, 2), (out2.shape, ref2.shape)
    assert jnp.allclose(out2, ref2, atol=1e-5, rtol=1e-5), "mismatch vs reference (T_out == 2)"

    print("KERNEL_OK")
</pallas_src>

<mosaic_0001>
module attributes {stable_mosaic.version = 11 : i64} {
  func.func @kernel(%arg0: i32, %arg1: memref<8x8x1024xf32, #tpu.memory_space<vmem>>, %arg2: memref<2x8x128xf32, #tpu.memory_space<vmem>>, %arg3: memref<1x128xf32, #tpu.memory_space<vmem>>, %arg4: memref<8x1x128xf32, #tpu.memory_space<vmem>>) attributes {dimension_semantics = [#tpu.dimension_semantics<parallel>], iteration_bounds = array<i64: 1>, scalar_prefetch = 0 : i64, scratch_operands = 0 : i64, tpu.core_type = #tpu.core_type<tc>, window_params = [{transform_indices = @transform_0, window_bounds = array<i64: 8, 8, 1024>}, {pipeline_mode = #tpu.pipeline_mode<synchronous>, transform_indices = @transform_1, window_bounds = array<i64: 2, 8, 128>}, {pipeline_mode = #tpu.pipeline_mode<synchronous>, transform_indices = @transform_2, window_bounds = array<i64: 1, 128>}, {transform_indices = @transform_3, window_bounds = array<i64: 8, 1, 128>}]} {
    %c0 = arith.constant 0 : index
    %c0_0 = arith.constant 0 : index
    %0 = vector.load %arg3[%c0, %c0_0] : memref<1x128xf32, #tpu.memory_space<vmem>>, vector<1x128xf32>
    %cst = arith.constant 0.000000e+00 : f32
    %1 = vector.broadcast %cst : f32 to vector<8x128xf32>
    %c0_1 = arith.constant 0 : index
    %c0_2 = arith.constant 0 : index
    %c0_3 = arith.constant 0 : index
    %2 = vector.load %arg1[%c0_1, %c0_2, %c0_3] : memref<8x8x1024xf32, #tpu.memory_space<vmem>>, vector<8x8x128xf32>
    %c0_4 = arith.constant 0 : index
    %c0_5 = arith.constant 0 : index
    %c128 = arith.constant 128 : index
    %3 = vector.load %arg1[%c0_4, %c0_5, %c128] : memref<8x8x1024xf32, #tpu.memory_space<vmem>>, vector<8x8x128xf32>
    %4 = arith.addf %2, %3 : vector<8x8x128xf32>
    %c0_6 = arith.constant 0 : index
    %c0_7 = arith.constant 0 : index
    %c256 = arith.constant 256 : index
    %5 = vector.load %arg1[%c0_6, %c0_7, %c256] : memref<8x8x1024xf32, #tpu.memory_space<vmem>>, vector<8x8x128xf32>
    %6 = arith.addf %4, %5 : vector<8x8x128xf32>
    %c0_8 = arith.constant 0 : index
    %c0_9 = arith.constant 0 : index
    %c384 = arith.constant 384 : index
    %7 = vector.load %arg1[%c0_8, %c0_9, %c384] : memref<8x8x1024xf32, #tpu.memory_space<vmem>>, vector<8x8x128xf32>
    %8 = arith.addf %6, %7 : vector<8x8x128xf32>
    %cst_10 = arith.constant dense<0.000000e+00> : vector<8x8xf32>
    %9 = vector.multi_reduction <add>, %8, %cst_10 [2] : vector<8x8x128xf32> to vector<8x8xf32>
    %c0_11 = arith.constant 0 : index
    %c0_12 = arith.constant 0 : index
    %c0_13 = arith.constant 0 : index
    %10 = vector.load %arg2[%c0_11, %c0_12, %c0_13] : memref<2x8x128xf32, #tpu.memory_space<vmem>>, vector<1x8x128xf32>
    %11 = vector.shape_cast %10 : vector<1x8x128xf32> to vector<8x128xf32>
    %cst_14 = arith.constant dense<0.000000e+00> : vector<8x128xf32>
    %12 = tpu.matmul %9, %11, %cst_14 {dimension_numbers = #tpu.dot_dimension_numbers<[1], [0], [0], [1], [0, 0, 1, 1], [], []>} : vector<8x8xf32>, vector<8x128xf32>, vector<8x128xf32> -> vector<8x128xf32>
    %13 = arith.addf %1, %12 : vector<8x128xf32>
    %c0_15 = arith.constant 0 : index
    %c0_16 = arith.constant 0 : index
    %c512 = arith.constant 512 : index
    %14 = vector.load %arg1[%c0_15, %c0_16, %c512] : memref<8x8x1024xf32, #tpu.memory_space<vmem>>, vector<8x8x128xf32>
    %c0_17 = arith.constant 0 : index
    %c0_18 = arith.constant 0 : index
    %c640 = arith.constant 640 : index
    %15 = vector.load %arg1[%c0_17, %c0_18, %c640] : memref<8x8x1024xf32, #tpu.memory_space<vmem>>, vector<8x8x128xf32>
    %16 = arith.addf %14, %15 : vector<8x8x128xf32>
    %c0_19 = arith.constant 0 : index
    %c0_20 = arith.constant 0 : index
    %c768 = arith.constant 768 : index
    %17 = vector.load %arg1[%c0_19, %c0_20, %c768] : memref<8x8x1024xf32, #tpu.memory_space<vmem>>, vector<8x8x128xf32>
    %18 = arith.addf %16, %17 : vector<8x8x128xf32>
    %c0_21 = arith.constant 0 : index
    %c0_22 = arith.constant 0 : index
    %c896 = arith.constant 896 : index
    %19 = vector.load %arg1[%c0_21, %c0_22, %c896] : memref<8x8x1024xf32, #tpu.memory_space<vmem>>, vector<8x8x128xf32>
    %20 = arith.addf %18, %19 : vector<8x8x128xf32>
    %cst_23 = arith.constant dense<0.000000e+00> : vector<8x8xf32>
    %21 = vector.multi_reduction <add>, %20, %cst_23 [2] : vector<8x8x128xf32> to vector<8x8xf32>
    %c1 = arith.constant 1 : index
    %c0_24 = arith.constant 0 : index
    %c0_25 = arith.constant 0 : index
    %22 = vector.load %arg2[%c1, %c0_24, %c0_25] : memref<2x8x128xf32, #tpu.memory_space<vmem>>, vector<1x8x128xf32>
    %23 = vector.shape_cast %22 : vector<1x8x128xf32> to vector<8x128xf32>
    %cst_26 = arith.constant dense<0.000000e+00> : vector<8x128xf32>
    %24 = tpu.matmul %21, %23, %cst_26 {dimension_numbers = #tpu.dot_dimension_numbers<[1], [0], [0], [1], [0, 0, 1, 1], [], []>} : vector<8x8xf32>, vector<8x128xf32>, vector<8x128xf32> -> vector<8x128xf32>
    %25 = arith.addf %13, %24 : vector<8x128xf32>
    %26 = vector.broadcast %0 : vector<1x128xf32> to vector<8x128xf32>
    %27 = arith.addf %25, %26 : vector<8x128xf32>
    %c0_27 = arith.constant 0 : index
    %c0_28 = arith.constant 0 : index
    %c0_29 = arith.constant 0 : index
    %28 = vector.load %arg4[%c0_27, %c0_28, %c0_29] : memref<8x1x128xf32, #tpu.memory_space<vmem>>, vector<8x1x128xf32>
    %29 = vector.shape_cast %28 : vector<8x1x128xf32> to vector<8x128xf32>
    %30 = vector.shape_cast %27 : vector<8x128xf32> to vector<8x1x128xf32>
    tpu.vector_store %arg4[%c0_27, %c0_28, %c0_29], %30 {strides = array<i32>} : memref<8x1x128xf32, #tpu.memory_space<vmem>>, vector<8x1x128xf32>,
    return
  }
  func.func @transform_0(%arg0: i32) -> (i32, i32, i32) {
    %c0_i32 = arith.constant 0 : i32
    %c0_i32_0 = arith.constant 0 : i32
    %c0_i32_1 = arith.constant 0 : i32
    return %arg0, %c0_i32, %c0_i32_0 : i32, i32, i32
  }
  func.func @transform_1(%arg0: i32) -> (i32, i32, i32) {
    %c0_i32 = arith.constant 0 : i32
    %c0_i32_0 = arith.constant 0 : i32
    %c0_i32_1 = arith.constant 0 : i32
    %c0_i32_2 = arith.constant 0 : i32
    return %c0_i32, %c0_i32_0, %c0_i32_1 : i32, i32, i32
  }
  func.func @transform_2(%arg0: i32) -> (i32, i32) {
    %c0_i32 = arith.constant 0 : i32
    %c0_i32_0 = arith.constant 0 : i32
    %c0_i32_1 = arith.constant 0 : i32
    return %c0_i32, %c0_i32_0 : i32, i32
  }
  func.func @transform_3(%arg0: i32) -> (i32, i32, i32) {
    %c0_i32 = arith.constant 0 : i32
    %c0_i32_0 = arith.constant 0 : i32
    %c0_i32_1 = arith.constant 0 : i32
    return %arg0, %c0_i32, %c0_i32_0 : i32, i32, i32
  }
}

</mosaic_0001>

<bundles_post_ra>
// kernel: tpu_custom_call.1
= control target key start
LH: loop header
LB: loop body
LE: loop exit
PB: predicated region body
PF: predicated region fallthrough
CT: control target
= control target key end

     0   :  { %8 = vsyncpa [#allocation3], 0  ;;  %s487_s0 = inlined_call_operand.hbm [shape: f32[8,8,1024], index: 0, kind: input, shape index: {}]   ;;  %s488_s1 = inlined_call_operand.hbm [shape: f32[2,8,128], index: 1, kind: input, shape index: {}]   ;;  %s489_s2 = inlined_call_operand.vmem [shape: f32[1,128], index: 2, kind: input, shape index: {}]   ;;  %s490_s3 = inlined_call_operand.hbm [shape: f32[8,1,128], index: 3, kind: output, shape index: {}]  }
   0x1   :  { %9 = vsyncpa [#allocation6], 0 }
   0x2   :  { %10 = vsyncpa [#allocation4], 0  ;;  %s15_s14 = sshll.u32 %s487_s0, 4  ;;  %s432_s15 = smov [#allocation2]   ;;  %s16_s14 = int_to_ptr.hbm [resolvable:$true] %s15_s14 }
   0x3   :  { %s17_s16 = sshll.u32 %s432_s15, 4  ;;  %s28_s19 = sshll.u32 %s488_s1, 4  ;;  %s18_s16 = int_to_ptr.vmem [resolvable:$true] %s17_s16  ;;  %s29_s19 = int_to_ptr.hbm [resolvable:$true] %s28_s19 }
   0x4   :  { %s433_s20 = smov 1024   ;;  %s434_s21 = smov 64  }
   0x5   :  { %23 = dma.hbm_to_vmem [thread:$0]  %s16_s14, 8192, %s18_s16, [#allocation3], %s433_s20, %s433_s20, %s434_s21  }
   0x6   :  { %s435_s22 = smov [#allocation5]   ;;  %s436_s24 = smov 128  }
   0x7   :  { %s30_s23 = sshll.u32 %s435_s22, 4  ;;  %s437_s25 = smov 8   ;;  %s31_s23 = int_to_ptr.vmem [resolvable:$true] %s30_s23 }
   0x8   :  { %36 = dma.hbm_to_vmem [thread:$0]  %s29_s19, 256, %s31_s23, [#allocation6], %s436_s24, %s436_s24, %s437_s25  }
   0x9   :  { %426 = dma.done.wait [#allocation3], 8192  }
   0xa   :  { %427 = vsyncadd [#allocation3], 4294959104 }
   0xb   :  { %428 = dma.done.wait [#allocation6], 256  }
   0xc   :  { %429 = vsyncadd [#allocation6], 4294967040  ;;  %v121_v0 = vld [vmem:[#allocation2 + $0x20] sm:$0xff]  ;;  %v129_v1 = vld [vmem:[#allocation2 + $0x28] sm:$0xff]  ;;  %vm213_vm0 = vcmask 1041409   ;;  %vm215_vm1 = vcmask 1042434  }
   0xd   :  { %v145_v2 = vld [vmem:[#allocation2 + $0x30] sm:$0xff]  ;;  %v137_v3 = vadd.f32 %v129_v1, %v121_v0  ;;  %v48_v4 = vld [vmem:[#allocation2] sm:$0xff]  ;;  %v56_v5 = vld [vmem:[#allocation2 + $0x8] sm:$0xff]  ;;  %vm217_vm2 = vcmask 1043459   ;;  %vm219_vm3 = vcmask 1044484   ;;  %vm221_vm4 = vcmask 1045509  }
   0xe   :  { %v161_v6 = vld [vmem:[#allocation2 + $0x38] sm:$0xff]  ;;  %v64_v7 = vadd.f32 %v56_v5, %v48_v4  ;;  %v72_v8 = vld [vmem:[#allocation2 + $0x10] sm:$0xff]  ;;  %v50_v9 = vld [vmem:[#allocation2 + $0x80] sm:$0xff]  ;;  %vm223_vm5 = vcmask 1046534   ;;  %vm225_vm6 = vcmask 1047559   ;;  %vm227_vm7 = vcmask 64512  }
   0xf   :  { %v153_v10 = vadd.f32 %v145_v2, %v137_v3  ;;  %v88_v11 = vld [vmem:[#allocation2 + $0x18] sm:$0xff]  ;;  %v58_v12 = vld [vmem:[#allocation2 + $0x88] sm:$0xff]  ;;  %v74_v13 = vld [vmem:[#allocation2 + $0x90] sm:$0xff]  ;;  %s438_s26 = smov [#allocation7]   ;;  %s328_s30 = sshll.u32 %s490_s3, 4  ;;  %s329_s30 = int_to_ptr.hbm [resolvable:$true] %s328_s30 }
  0x10   :  { %v80_v14 = vadd.f32 %v72_v8, %v64_v7  ;;  %v66_v15 = vadd.f32 %v58_v12, %v50_v9  ;;  %v122_v16 = vld [vmem:[#allocation2 + $0x60] sm:$0xff]  ;;  %v130_v17 = vld [vmem:[#allocation2 + $0x68] sm:$0xff]  ;;  %v146_v18 = vld [vmem:[#allocation2 + $0x70] sm:$0xff]  ;;  %s326_s27 = sshll.u32 %s438_s26, 4  ;;  %s440_s4 = smov 1   ;;  %s327_s27 = int_to_ptr.vmem [resolvable:$true] %s326_s27 }
  0x11   :  { %v169_v19 = vadd.f32 %v161_v6, %v153_v10  ;;  %v90_v20 = vld [vmem:[#allocation2 + $0x98] sm:$0xff]  ;;  %v138_v21 = vadd.f32 %v130_v17, %v122_v16  ;;  %v49_v22 = vld [vmem:[#allocation2 + $0x40] sm:$0xff]  ;;  %v57_v23 = vld [vmem:[#allocation2 + $0x48] sm:$0xff] }
  0x12   :  { %v96_v24 = vadd.f32 %v88_v11, %v80_v14  ;;  %v82_v25 = vadd.f32 %v74_v13, %v66_v15  ;;  %v65_v26 = vadd.f32 %v57_v23, %v49_v22  ;;  %v73_v27 = vld [vmem:[#allocation2 + $0x50] sm:$0xff]  ;;  %v123_v28 = vld [vmem:[#allocation2 + $0xa0] sm:$0xff]  ;;  %v131_v30 = vld [vmem:[#allocation2 + $0xa8] sm:$0xff] }
  0x13   :  { %177 = vadd.xlane.f32.xlu1 %v169_v19  ;;  %v154_v29 = vadd.f32 %v146_v18, %v138_v21  ;;  %v147_v31 = vld [vmem:[#allocation2 + $0xb0] sm:$0xff]  ;;  %v162_v33 = vld [vmem:[#allocation2 + $0x78] sm:$0xff]  ;;  %v139_v35 = vadd.f32 %v131_v30, %v123_v28  ;;  %v124_v36 = vld [vmem:[#allocation2 + $0xe0] sm:$0xff] }
  0x14   :  { %104 = vadd.xlane.f32.xlu0 %v96_v24  ;;  %v98_v32 = vadd.f32 %v90_v20, %v82_v25  ;;  %v81_v34 = vadd.f32 %v73_v27, %v65_v26  ;;  %v132_v37 = vld [vmem:[#allocation2 + $0xe8] sm:$0xff]  ;;  %v89_v38 = vld [vmem:[#allocation2 + $0x58] sm:$0xff]  ;;  %v51_v39 = vld [vmem:[#allocation2 + $0xc0] sm:$0xff] }
  0x15   :  { %v59_v40 = vld [vmem:[#allocation2 + $0xc8] sm:$0xff]  ;;  %v155_v41 = vadd.f32 %v147_v31, %v139_v35  ;;  %v170_v42 = vadd.f32 %v162_v33, %v154_v29  ;;  %v163_v43 = vld [vmem:[#allocation2 + $0xb8] sm:$0xff]  ;;  %v140_v44 = vadd.f32 %v132_v37, %v124_v36  ;;  %v52_v45 = vld [vmem:[#allocation2 + $0x100] sm:$0xff] }
  0x16   :  { %108 = vadd.xlane.f32.xlu2 %v98_v32  ;;  %v60_v46 = vld [vmem:[#allocation2 + $0x108] sm:$0xff]  ;;  %v97_v47 = vadd.f32 %v89_v38, %v81_v34  ;;  %v148_v48 = vld [vmem:[#allocation2 + $0xf0] sm:$0xff]  ;;  %v67_v49 = vadd.f32 %v59_v40, %v51_v39  ;;  %v164_v55 = vld [vmem:[#allocation2 + $0xf8] sm:$0xff] }
  0x17   :  { %v75_v50 = vld [vmem:[#allocation2 + $0xd0] sm:$0xff]  ;;  %v171_v51 = vadd.f32 %v163_v43, %v155_v41  ;;  %v68_v52 = vadd.f32 %v60_v46, %v52_v45  ;;  %v156_v53 = vadd.f32 %v148_v48, %v140_v44  ;;  %v53_v57 = vld [vmem:[#allocation2 + $0x140] sm:$0xff]  ;;  %v61_v58 = vld [vmem:[#allocation2 + $0x148] sm:$0xff] }
  0x18   :  { %v76_v54 = vld [vmem:[#allocation2 + $0x110] sm:$0xff]  ;;  %v83_v56 = vadd.f32 %v75_v50, %v67_v49  ;;  %v91_v59 = vld [vmem:[#allocation2 + $0xd8] sm:$0xff]  ;;  %v125_v60 = vld [vmem:[#allocation2 + $0x120] sm:$0xff]  ;;  %v69_v1 = vadd.f32 %v61_v58, %v53_v57  ;;  %v203_v57 = vlaneseq }
  0x19   :  { %v133_v61 = vld [vmem:[#allocation2 + $0x128] sm:$0xff]  ;;  %v84_v62 = vadd.f32 %v76_v54, %v68_v52  ;;  %v172_v63 = vadd.f32 %v164_v55, %v156_v53  ;;  %v92_v0 = vld [vmem:[#allocation2 + $0x118] sm:$0xff]  ;;  %v126_v2 = vld [vmem:[#allocation2 + $0x160] sm:$0xff] }
  0x1a   :  { %v134_v3 = vld [vmem:[#allocation2 + $0x168] sm:$0xff]  ;;  %v99_v4 = vadd.f32 %v91_v59, %v83_v56  ;;  %v77_v5 = vld [vmem:[#allocation2 + $0x150] sm:$0xff]  ;;  %v141_v6 = vadd.f32 %v133_v61, %v125_v60  ;;  %v93_v12 = vld [vmem:[#allocation2 + $0x158] sm:$0xff]  ;;  %v204_v60 = vand.u32 127, %v203_v57 }
  0x1b   :  { %179 = vadd.xlane.f32.xlu1 %v170_v42  ;;  %v149_v7 = vld [vmem:[#allocation2 + $0x130] sm:$0xff]  ;;  %v100_v8 = vadd.f32 %v92_v0, %v84_v62  ;;  %v142_v9 = vadd.f32 %v134_v3, %v126_v2  ;;  %v85_v10 = vadd.f32 %v77_v5, %v69_v1  ;;  %v127_v14 = vld [vmem:[#allocation2 + $0x1a0] sm:$0xff]  ;;  %v135_v15 = vld [vmem:[#allocation2 + $0x1a8] sm:$0xff] }
  0x1c   :  { %106 = vadd.xlane.f32.xlu0 %v97_v47  ;;  %v150_v11 = vld [vmem:[#allocation2 + $0x170] sm:$0xff]  ;;  %v157_v13 = vadd.f32 %v149_v7, %v141_v6  ;;  %v165_v16 = vld [vmem:[#allocation2 + $0x138] sm:$0xff]  ;;  %v54_v17 = vld [vmem:[#allocation2 + $0x180] sm:$0xff]  ;;  %v143_v22 = vadd.f32 %v135_v15, %v127_v14 }
  0x1d   :  { %v62_v18 = vld [vmem:[#allocation2 + $0x188] sm:$0xff]  ;;  %v158_v19 = vadd.f32 %v150_v11, %v142_v9  ;;  %v101_v20 = vadd.f32 %v93_v12, %v85_v10  ;;  %v166_v21 = vld [vmem:[#allocation2 + $0x178] sm:$0xff]  ;;  %v55_v23 = vld [vmem:[#allocation2 + $0x1c0] sm:$0xff] }
  0x1e   :  { %181 = vadd.xlane.f32.xlu2 %v171_v51  ;;  %v63_v24 = vld [vmem:[#allocation2 + $0x1c8] sm:$0xff]  ;;  %v173_v25 = vadd.f32 %v165_v16, %v157_v13  ;;  %v151_v26 = vld [vmem:[#allocation2 + $0x1b0] sm:$0xff]  ;;  %v70_v27 = vadd.f32 %v62_v18, %v54_v17  ;;  %v167_v33 = vld [vmem:[#allocation2 + $0x1b8] sm:$0xff] }
  0x1f   :  { %v78_v28 = vld [vmem:[#allocation2 + $0x190] sm:$0xff]  ;;  %v174_v29 = vadd.f32 %v166_v21, %v158_v19  ;;  %v71_v30 = vadd.f32 %v63_v24, %v55_v23  ;;  %v159_v31 = vadd.f32 %v151_v26, %v143_v22  ;;  %v94_v35 = vld [vmem:[#allocation2 + $0x198] sm:$0xff]  ;;  %v128_v36 = vld [vmem:[#allocation2 + $0x1e0] sm:$0xff] }
  0x20   :  { %v79_v32 = vld [vmem:[#allocation2 + $0x1d0] sm:$0xff]  ;;  %v86_v34 = vadd.f32 %v78_v28, %v70_v27  ;;  %v136_v37 = vld [vmem:[#allocation2 + $0x1e8] sm:$0xff]  ;;  %v95_v40 = vld [vmem:[#allocation2 + $0x1d8] sm:$0xff] }
  0x21   :  { %v87_v38 = vadd.f32 %v79_v32, %v71_v30  ;;  %v175_v39 = vadd.f32 %v167_v33, %v159_v31  ;;  %v144_v42 = vadd.f32 %v136_v37, %v128_v36  ;;  %v152_v43 = vld [vmem:[#allocation2 + $0x1f0] sm:$0xff]  ;;  %v168_v46 = vld [vmem:[#allocation2 + $0x1f8] sm:$0xff]  ;;  %v120_v51 = vld [vmem:[#allocation5] sm:$0xff] }
  0x22   :  { %v102_v41 = vadd.f32 %v94_v35, %v86_v34  ;;  %290 = vmatpush.msra.mxu1 %v120_v51  ;;  %v194_v54 = vld [vmem:[#allocation5 + $0x8] sm:$0xff]  ;;  %v353_v34 = vld [vmem:[%s489_s2] ss:$0 sm:$0xff]  ;;  %s439_s2 = smov 16  }
  0x23   :  { %183 = vadd.xlane.f32.xlu1 %v172_v63  ;;  %v103_v44 = vadd.f32 %v95_v40, %v87_v38  ;;  %v160_v45 = vadd.f32 %v152_v43, %v144_v42  ;;  %245 = vmatpush.msra.mxu0 %v194_v54 }
  0x24   :  { %110 = vadd.xlane.f32.xlu0 %v99_v4 }
  0x25   :  { %v176_v47 = vadd.f32 %v168_v46, %v160_v45 }
  0x26   :  { %112 = vadd.xlane.f32.xlu2 %v100_v8 }
  0x2b   :  { %114 = vadd.xlane.f32.xlu1 %v101_v20 }
  0x2c   :  { %185 = vadd.xlane.f32.xlu0 %v173_v25 }
  0x2e   :  { %187 = vadd.xlane.f32.xlu2 %v174_v29 }
  0x33   :  { %189 = vadd.xlane.f32.xlu1 %v175_v39 }
  0x34   :  { %116 = vadd.xlane.f32.xlu0 %v102_v41 }
  0x36   :  { %118 = vadd.xlane.f32.xlu2 %v103_v44 }
  0x3c   :  { %191 = vadd.xlane.f32.xlu0 %v176_v47 }
  0x86   :  { %v178_v48 = vpop.xlane.xlu1 %177 }
  0x87   :  { %v105_v49 = vpop.xlane.xlu0 %104  ;;  %v205_v5 = vperm.slane %v178_v48, %v204_v60 }
  0x88   :  { %v258_v62 = vperm.slane %v105_v49, %v204_v60 }
  0x89   :  { %v109_v50 = vpop.xlane.xlu2 %108 }
  0x8a   :  { %v260_v0 = vperm.slane %v109_v50, %v204_v60 }
  0x8e   :  { %v180_v52 = vpop.xlane.xlu1 %179 }
  0x8f   :  { %v107_v53 = vpop.xlane.xlu0 %106  ;;  %v206_v6 = vperm.slane %v180_v52, %v204_v60 }
  0x90   :  { %v259_v61 = vperm.slane %v107_v53, %v204_v60 }
  0x91   :  { %v182_v55 = vpop.xlane.xlu2 %181  ;;  %v214_v13 = vsel %vm213_vm0, %v206_v6, %v205_v5 }
  0x92   :  { %v266_v2 = vsel %vm213_vm0, %v259_v61, %v258_v62  ;;  %v207_v11 = vperm.slane %v182_v55, %v204_v60 }
  0x93   :  { %v267_v7 = vsel %vm215_vm1, %v260_v0, %v266_v2 }
  0x94   :  { %v216_v23 = vsel %vm215_vm1, %v207_v11, %v214_v13 }
  0x96   :  { %v184_v56 = vpop.xlane.xlu1 %183 }
  0x97   :  { %v111_v58 = vpop.xlane.xlu0 %110  ;;  %v208_v14 = vperm.slane %v184_v56, %v204_v60 }
  0x98   :  { %v261_v3 = vperm.slane %v111_v58, %v204_v60 }
  0x99   :  { %v113_v59 = vpop.xlane.xlu2 %112  ;;  %v218_v24 = vsel %vm217_vm2, %v208_v14, %v216_v23 }
  0x9a   :  { %v262_v8 = vperm.slane %v113_v59, %v204_v60  ;;  %v268_v9 = vsel %vm217_vm2, %v261_v3, %v267_v7 }
  0x9c   :  { %v269_v15 = vsel %vm219_vm3, %v262_v8, %v268_v9 }
  0x9e   :  { %v115_v1 = vpop.xlane.xlu1 %114 }
  0x9f   :  { %v186_v63 = vpop.xlane.xlu0 %185  ;;  %v263_v10 = vperm.slane %v115_v1, %v204_v60 }
  0xa0   :  { %v209_v18 = vperm.slane %v186_v63, %v204_v60 }
  0xa1   :  { %v188_v4 = vpop.xlane.xlu2 %187  ;;  %v270_v17 = vsel %vm221_vm4, %v263_v10, %v269_v15 }
  0xa2   :  { %v210_v25 = vperm.slane %v188_v4, %v204_v60  ;;  %v220_v27 = vsel %vm219_vm3, %v209_v18, %v218_v24 }
  0xa4   :  { %v222_v30 = vsel %vm221_vm4, %v210_v25, %v220_v27 }
  0xa6   :  { %v190_v20 = vpop.xlane.xlu1 %189 }
  0xa7   :  { %v117_v12 = vpop.xlane.xlu0 %116  ;;  %v211_v28 = vperm.slane %v190_v20, %v204_v60 }
  0xa8   :  { %v264_v16 = vperm.slane %v117_v12, %v204_v60 }
  0xa9   :  { %v119_v19 = vpop.xlane.xlu2 %118  ;;  %v224_v32 = vsel %vm223_vm5, %v211_v28, %v222_v30 }
  0xaa   :  { %v265_v21 = vperm.slane %v119_v19, %v204_v60  ;;  %v271_v22 = vsel %vm223_vm5, %v264_v16, %v270_v17 }
  0xac   :  { %v272_v26 = vsel %vm225_vm6, %v265_v21, %v271_v22 }
  0xad   :  { %343 = vmatmul.msk.f32.vlgmr.msra.gmra.mxu1 %vm227_vm7, %v272_v26 }
  0xaf   :  { %v192_v29 = vpop.xlane.xlu0 %191 }
  0xb0   :  { %v212_v31 = vperm.slane %v192_v29, %v204_v60 }
  0xb2   :  { %v226_v33 = vsel %vm225_vm6, %v212_v31, %v224_v32 }
  0xb3   :  { %342 = vmatmul.msk.f32.vlgmr.msra.gmra.mxu0 %vm227_vm7, %v226_v33 }
 0x12a   :  { %v292_v35 = vpop.f32.mrf.mxu1 }
 0x130   :  { %v247_v36 = vpop.f32.mrf.mxu0 }
 0x131   :  { %v293_v37 = vadd.f32 %v292_v35, %v247_v36 }
 0x133   :  { %v298_v38 = vadd.f32 %v353_v34, %v293_v37 }
 0x135   :  { %v300_v39 = vrot.slane %v298_v38, 1  ;;  %v301_v40 = vrot.slane %v298_v38, 2  ;;  %v302_v41 = vrot.slane %v298_v38, 3  ;;  %314 = vst [vmem:[#allocation7] sm:$0x1] %v298_v38  ;;  %v303_v42 = vrot.slane %v298_v38, 4 }
 0x136   :  { %v304_v43 = vrot.slane %v298_v38, 5  ;;  %v305_v44 = vrot.slane %v298_v38, 6  ;;  %v306_v45 = vrot.slane %v298_v38, 7 }
 0x137   :  { %315 = vst [vmem:[#allocation7 + $0x1] sm:$0x1] %v300_v39 }
 0x138   :  { %316 = vst [vmem:[#allocation7 + $0x2] sm:$0x1] %v301_v40 }
 0x139   :  { %317 = vst [vmem:[#allocation7 + $0x3] sm:$0x1] %v302_v41 }
 0x13a   :  { %318 = vst [vmem:[#allocation7 + $0x4] sm:$0x1] %v303_v42 }
 0x13b   :  { %319 = vst [vmem:[#allocation7 + $0x5] sm:$0x1] %v304_v43 }
 0x13c   :  { %320 = vst [vmem:[#allocation7 + $0x6] sm:$0x1] %v305_v44 }
 0x13d   :  { %321 = vst [vmem:[#allocation7 + $0x7] sm:$0x1] %v306_v45 }
 0x13e   :  { %334 = dma.vmem_to_hbm [thread:$0]  %s327_s27, 128, %s329_s30, [#allocation4], %s439_s2, %s439_s2, %s440_s4  }
 0x13f   :  { %430 = dma.done.wait [#allocation4], 128  }
 0x140   :  { %431 = vsyncadd [#allocation4], 4294967168 }
 0x141   :  { %339 = vsyncpa [#allocation3], 1 }
 0x142   :  { %340 = vsyncpa [#allocation6], 1 }
 0x143   :  { %341 = vsyncpa [#allocation4], 1 }

</bundles_post_ra>
